<compile_context>
chip_gen: v7x
topology: tpu7x:2x2x1
jax: 0.10.0
libtpu: 0.0.40
codegen_flags: <defaults>
</compile_context>

<pallas_src>
import functools

import numpy as np
import jax
import jax.numpy as jnp
from jax.experimental import pallas as pl
from jax.experimental.pallas import tpu as pltpu


# ----------------------------- fused kernel -----------------------------

def _fused_mlp_expmap_kernel(*refs, n_layers, activation, eps, approx_recip):
    """refs = (x, w0,b0, ..., w_{L-1},b_{L-1}, G, GT, Pc, Pt, out).

    x  : (TB, Din)       activations (one batch tile)
    wi : (Din_i, Dout_i) resident weights (y = x @ W + b, torch Linear with W stored transposed)
    bi : (1, Dout_i)     resident bias row (broadcasts over the batch tile)
    G  : (D, k)    0/1 group-indicator -> per-column squared norms via matmul
    GT : (k, D)    broadcast the (B,k) scale back over each group's n-1 columns
    Pc : (k, n*k)  scatter cos(norm_j)        to flat index 0*k + j
    Pt : (D, n*k)  scatter t[j*(n-1)+m]*s_j   to flat index (m+1)*k + j
    out: (TB, n*k) == V reshaped row-major (B, n, k) -> (B, n*k)
    """
    x_ref = refs[0]
    layer_refs = refs[1:1 + 2 * n_layers]
    g_ref, gt_ref, pc_ref, pt_ref = refs[1 + 2 * n_layers: 5 + 2 * n_layers]
    out_ref = refs[5 + 2 * n_layers]

    h = x_ref[...].astype(jnp.float32)

    # ---- MLP layers (static unroll; weights resident in VMEM) ----
    for layer in range(n_layers):
        w = layer_refs[2 * layer][...]
        b = layer_refs[2 * layer + 1][...]          # (1, Dout), broadcasts
        h = jnp.dot(h, w, preferred_element_type=jnp.float32) + b
        if layer < n_layers - 1:                    # no activation after last Linear
            if activation == "tanh":
                h = jnp.tanh(h)
            elif activation == "relu":
                h = jnp.maximum(h, 0.0)
            elif activation == "sigmoid":
                h = jax.nn.sigmoid(h)
            # "none": passthrough

    # ---- batch_ExpMap_sphere, kept 2D ----
    # per tangent-column j: norm_j = ||h[:, j*(n-1):(j+1)*(n-1)]||
    sumsq = jnp.dot(h * h, g_ref[...], preferred_element_type=jnp.float32)   # (TB, k)
    norm = jnp.sqrt(sumsq)                                                   # (TB, k)
    cosn = jnp.cos(norm)                                                     # (TB, k)
    if approx_recip:
        inv = pl.reciprocal(norm + eps, approx=True)     # EUP slot, ~free
    else:
        inv = 1.0 / (norm + eps)
    scale = jnp.sin(norm) * inv                                              # (TB, k)

    scale_full = jnp.dot(scale, gt_ref[...], preferred_element_type=jnp.float32)  # (TB, D)
    t_scaled = h * scale_full                                                # (TB, D)

    # Assemble V lane-densely as (TB, n*k) via constant permutation matmuls:
    #   V[b, 0, j] = cos(norm_j)
    #   V[b, i, j] = h[b, j*(n-1)+(i-1)] * scale_j   (i >= 1)
    v_flat = (jnp.dot(cosn, pc_ref[...], preferred_element_type=jnp.float32)
              + jnp.dot(t_scaled, pt_ref[...], preferred_element_type=jnp.float32))
    out_ref[...] = v_flat.astype(out_ref.dtype)


# ------------------- constants for the expmap assembly -------------------

def _expmap_constants(k, n, dtype=np.float32):
    nm1 = n - 1
    D = k * nm1
    G = np.zeros((D, k), dtype)
    Pc = np.zeros((k, n * k), dtype)
    Pt = np.zeros((D, n * k), dtype)
    for j in range(k):
        Pc[j, 0 * k + j] = 1.0
        for m in range(nm1):
            G[j * nm1 + m, j] = 1.0
            Pt[j * nm1 + m, (m + 1) * k + j] = 1.0
    return G, np.ascontiguousarray(G.T), Pc, Pt


def _default_batch_tile(B):
    """Largest divisor of B that is a multiple of 8 and <= 512 (whole B if small)."""
    if B <= 512:
        return B
    for tb in range(512, 7, -8):
        if B % tb == 0:
            return tb
    return B  # no suitable divisor; fall back to the whole batch


# ----------------------------- wrappers -----------------------------

def mlp_expmap_forward(x, params, k, activation="tanh", eps=1e-6,
                       batch_tile=None, approx_recip=True):
    """Fused (Linear+act)* -> batch_ExpMap_sphere.  params may be [] (pure ExpMap).

    x: (B, Din) f32.  Each param is (W:(Din,Dout), b:(Dout,)).  Returns V: (B, n, k).
    """
    B = x.shape[0]
    D = params[-1][0].shape[1] if params else x.shape[1]
    assert D % k == 0, (D, k)
    n = D // k + 1

    TB = _default_batch_tile(B) if batch_tile is None else batch_tile
    assert B % TB == 0 and (TB == B or TB % 8 == 0), (B, TB)

    G, GT, Pc, Pt = (jnp.asarray(c) for c in _expmap_constants(k, n))

    const_map = lambda i: (0, 0)
    args = [x]
    in_specs = [pl.BlockSpec((TB, x.shape[1]), lambda i: (i, 0))]
    for (w, b) in params:
        b2 = b.reshape(1, -1)
        args += [w, b2]
        in_specs += [pl.BlockSpec(w.shape, const_map),
                     pl.BlockSpec(b2.shape, const_map)]
    for c in (G, GT, Pc, Pt):
        args.append(c)
        in_specs.append(pl.BlockSpec(c.shape, const_map))

    kernel = functools.partial(
        _fused_mlp_expmap_kernel,
        n_layers=len(params), activation=activation, eps=eps,
        approx_recip=approx_recip)

    v_flat = pl.pallas_call(
        kernel,
        out_shape=jax.ShapeDtypeStruct((B, n * k), x.dtype),
        grid=(pl.cdiv(B, TB),),
        in_specs=in_specs,
        out_specs=pl.BlockSpec((TB, n * k), lambda i: (i, 0)),
        compiler_params=pltpu.CompilerParams(
            dimension_semantics=("parallel",)),   # batch tiles split across TCs on v7x
    )(*args)

    # Row-major (B, n*k) -> (B, n, k) is a free metadata reshape (no transpose).
    return v_flat.reshape(B, n, k)


def batch_expmap_sphere(v_T, k, eps=1e-6, **kw):
    """Pallas equivalent of the batch_ExpMap_sphere module: v_T (B, (n-1)k) -> V (B, n, k)."""
    return mlp_expmap_forward(v_T, [], k, activation="none", eps=eps, **kw)


# ------------------- params init (nn.Linear-shaped) -------------------

def init_mlp_params(key, inputs, hiddens, out):
    dims = [inputs] + list(hiddens) + [out]
    params = []
    for din, dout in zip(dims[:-1], dims[1:]):
        key, kw, kb = jax.random.split(key, 3)
        bound = 1.0 / float(np.sqrt(din))
        w = jax.random.uniform(kw, (din, dout), jnp.float32, -bound, bound)
        b = jax.random.uniform(kb, (dout,), jnp.float32, -bound, bound)
        params.append((w, b))
    return params


# ------------- pure-JAX references (torch semantics) -------------

def ref_expmap(v_T, k, eps=1e-6):
    B, D = v_T.shape
    nm1 = D // k
    t = v_T.reshape(B, k, nm1)                         # tangent columns
    norm = jnp.sqrt(jnp.sum(t * t, axis=-1))           # (B, k)
    cos_row = jnp.cos(norm)[:, None, :]                # (B, 1, k)
    scale = jnp.sin(norm) / (norm + eps)               # (B, k)
    sin_rows = jnp.transpose(t * scale[:, :, None], (0, 2, 1))  # (B, n-1, k)
    return jnp.concatenate([cos_row, sin_rows], axis=1)          # (B, n, k)


def ref_mlp(x, params, activation):
    act = {"tanh": jnp.tanh, "relu": lambda v: jnp.maximum(v, 0.0),
           "sigmoid": jax.nn.sigmoid, "none": lambda v: v}[activation]
    h = x
    for i, (w, b) in enumerate(params):
        h = h @ w + b
        if i < len(params) - 1:
            h = act(h)
    return h


# ----------------------------- demo / check -----------------------------

if __name__ == "__main__":
    key = jax.random.PRNGKey(0)
    B, k, n = 8, 2, 7                 # 7-dof actuation, 2-dof action
    D = k * (n - 1)                   # 12

    # Tolerance 5e-3 because the kernel uses the EUP approximate reciprocal
    # (pl.reciprocal(approx=True)) while the reference divides exactly.
    TOL = dict(atol=5e-3, rtol=5e-3)

    # 1) batch_ExpMap_sphere alone (the spec module)
    key, kv = jax.random.split(key)
    v_T = jax.random.normal(kv, (B, D), jnp.float32)
    V = jax.block_until_ready(batch_expmap_sphere(v_T, k))
    V_ref = ref_expmap(v_T, k)
    assert V.shape == (B, n, k), V.shape
    assert jnp.allclose(V, V_ref, **TOL), float(jnp.max(jnp.abs(V - V_ref)))

    # 2) Fused MLP (tanh) + ExpMap tail, one pallas_call end-to-end
    inputs, hiddens = 16, [32, 32]
    key, kp, kx = jax.random.split(key, 3)
    params = init_mlp_params(kp, inputs, hiddens, D)
    x = jax.random.normal(kx, (B, inputs), jnp.float32)
    y = jax.block_until_ready(mlp_expmap_forward(x, params, k, activation="tanh"))
    y_ref = ref_expmap(ref_mlp(x, params, "tanh"), k)
    assert y.shape == (B, n, k), y.shape
    assert jnp.allclose(y, y_ref, **TOL), float(jnp.max(jnp.abs(y - y_ref)))

    print("KERNEL_OK")
</pallas_src>

<mosaic_0001>
module attributes {stable_mosaic.version = 11 : i64} {
  func.func @_fused_mlp_expmap_kernel(%arg0: i32, %arg1: memref<8x12xf32, #tpu.memory_space<vmem>>, %arg2: memref<12x2xf32, #tpu.memory_space<vmem>>, %arg3: memref<2x12xf32, #tpu.memory_space<vmem>>, %arg4: memref<2x14xf32, #tpu.memory_space<vmem>>, %arg5: memref<12x14xf32, #tpu.memory_space<vmem>>, %arg6: memref<8x14xf32, #tpu.memory_space<vmem>>) attributes {dimension_semantics = [#tpu.dimension_semantics<parallel>], iteration_bounds = array<i64: 1>, scalar_prefetch = 0 : i64, scratch_operands = 0 : i64, tpu.core_type = #tpu.core_type<tc>, window_params = [{transform_indices = @transform_0, window_bounds = array<i64: 8, 12>}, {pipeline_mode = #tpu.pipeline_mode<synchronous>, transform_indices = @transform_1, window_bounds = array<i64: 12, 2>}, {pipeline_mode = #tpu.pipeline_mode<synchronous>, transform_indices = @transform_2, window_bounds = array<i64: 2, 12>}, {pipeline_mode = #tpu.pipeline_mode<synchronous>, transform_indices = @transform_3, window_bounds = array<i64: 2, 14>}, {pipeline_mode = #tpu.pipeline_mode<synchronous>, transform_indices = @transform_4, window_bounds = array<i64: 12, 14>}, {transform_indices = @transform_5, window_bounds = array<i64: 8, 14>}]} {
    %c0 = arith.constant 0 : index
    %c0_0 = arith.constant 0 : index
    %0 = vector.load %arg1[%c0, %c0_0] : memref<8x12xf32, #tpu.memory_space<vmem>>, vector<8x12xf32>
    %1 = arith.mulf %0, %0 : vector<8x12xf32>
    %c0_1 = arith.constant 0 : index
    %c0_2 = arith.constant 0 : index
    %2 = vector.load %arg2[%c0_1, %c0_2] : memref<12x2xf32, #tpu.memory_space<vmem>>, vector<12x2xf32>
    %cst = arith.constant dense<0.000000e+00> : vector<8x2xf32>
    %3 = tpu.matmul %1, %2, %cst {dimension_numbers = #tpu.dot_dimension_numbers<[1], [0], [0], [1], [0, 0, 1, 1], [], []>} : vector<8x12xf32>, vector<12x2xf32>, vector<8x2xf32> -> vector<8x2xf32>
    %4 = math.sqrt %3 : vector<8x2xf32>
    %5 = math.cos %4 : vector<8x2xf32>
    %cst_3 = arith.constant 9.99999997E-7 : f32
    %6 = vector.broadcast %cst_3 : f32 to vector<8x2xf32>
    %7 = arith.addf %4, %6 : vector<8x2xf32>
    %8 = tpu.reciprocal %7 {approx = true} : vector<8x2xf32> -> vector<8x2xf32>
    %9 = math.sin %4 : vector<8x2xf32>
    %10 = arith.mulf %9, %8 : vector<8x2xf32>
    %c0_4 = arith.constant 0 : index
    %c0_5 = arith.constant 0 : index
    %11 = vector.load %arg3[%c0_4, %c0_5] : memref<2x12xf32, #tpu.memory_space<vmem>>, vector<2x12xf32>
    %cst_6 = arith.constant dense<0.000000e+00> : vector<8x12xf32>
    %12 = tpu.matmul %10, %11, %cst_6 {dimension_numbers = #tpu.dot_dimension_numbers<[1], [0], [0], [1], [0, 0, 1, 1], [], []>} : vector<8x2xf32>, vector<2x12xf32>, vector<8x12xf32> -> vector<8x12xf32>
    %13 = arith.mulf %0, %12 : vector<8x12xf32>
    %c0_7 = arith.constant 0 : index
    %c0_8 = arith.constant 0 : index
    %14 = vector.load %arg4[%c0_7, %c0_8] : memref<2x14xf32, #tpu.memory_space<vmem>>, vector<2x14xf32>
    %cst_9 = arith.constant dense<0.000000e+00> : vector<8x14xf32>
    %15 = tpu.matmul %5, %14, %cst_9 {dimension_numbers = #tpu.dot_dimension_numbers<[1], [0], [0], [1], [0, 0, 1, 1], [], []>} : vector<8x2xf32>, vector<2x14xf32>, vector<8x14xf32> -> vector<8x14xf32>
    %c0_10 = arith.constant 0 : index
    %c0_11 = arith.constant 0 : index
    %16 = vector.load %arg5[%c0_10, %c0_11] : memref<12x14xf32, #tpu.memory_space<vmem>>, vector<12x14xf32>
    %cst_12 = arith.constant dense<0.000000e+00> : vector<8x14xf32>
    %17 = tpu.matmul %13, %16, %cst_12 {dimension_numbers = #tpu.dot_dimension_numbers<[1], [0], [0], [1], [0, 0, 1, 1], [], []>} : vector<8x12xf32>, vector<12x14xf32>, vector<8x14xf32> -> vector<8x14xf32>
    %18 = arith.addf %15, %17 : vector<8x14xf32>
    %c0_13 = arith.constant 0 : index
    %c0_14 = arith.constant 0 : index
    %19 = vector.load %arg6[%c0_13, %c0_14] : memref<8x14xf32, #tpu.memory_space<vmem>>, vector<8x14xf32>
    tpu.vector_store %arg6[%c0_13, %c0_14], %18 {strides = array<i32>} : memref<8x14xf32, #tpu.memory_space<vmem>>, vector<8x14xf32>,
    return
  }
  func.func @transform_0(%arg0: i32) -> (i32, i32) {
    %c0_i32 = arith.constant 0 : i32
    %c0_i32_0 = arith.constant 0 : i32
    return %arg0, %c0_i32 : i32, i32
  }
  func.func @transform_1(%arg0: i32) -> (i32, i32) {
    %c0_i32 = arith.constant 0 : i32
    %c0_i32_0 = arith.constant 0 : i32
    %c0_i32_1 = arith.constant 0 : i32
    return %c0_i32, %c0_i32_0 : i32, i32
  }
  func.func @transform_2(%arg0: i32) -> (i32, i32) {
    %c0_i32 = arith.constant 0 : i32
    %c0_i32_0 = arith.constant 0 : i32
    %c0_i32_1 = arith.constant 0 : i32
    return %c0_i32, %c0_i32_0 : i32, i32
  }
  func.func @transform_3(%arg0: i32) -> (i32, i32) {
    %c0_i32 = arith.constant 0 : i32
    %c0_i32_0 = arith.constant 0 : i32
    %c0_i32_1 = arith.constant 0 : i32
    return %c0_i32, %c0_i32_0 : i32, i32
  }
  func.func @transform_4(%arg0: i32) -> (i32, i32) {
    %c0_i32 = arith.constant 0 : i32
    %c0_i32_0 = arith.constant 0 : i32
    %c0_i32_1 = arith.constant 0 : i32
    return %c0_i32, %c0_i32_0 : i32, i32
  }
  func.func @transform_5(%arg0: i32) -> (i32, i32) {
    %c0_i32 = arith.constant 0 : i32
    %c0_i32_0 = arith.constant 0 : i32
    return %arg0, %c0_i32 : i32, i32
  }
}

</mosaic_0001>

<bundles_post_ra>
// kernel: tpu_custom_call.1
= control target key start
LH: loop header
LB: loop body
LE: loop exit
PB: predicated region body
PF: predicated region fallthrough
CT: control target
= control target key end

     0   :  { %vm29_vm0 = vcmask 1043456   ;;  %v678_v2 = vmov 0.0|0.0   ;;  %vm679_vm1 = vmmov 1   ;;  %vm680_vm3 = vmmov 0   ;;  %s801_s0 = inlined_call_operand.vmem [shape: f32[8,12], index: 0, kind: input, shape index: {}]   ;;  %s802_s1 = inlined_call_operand.vmem [shape: f32[12,2], index: 1, kind: input, shape index: {}]   ;;  %s803_s2 = inlined_call_operand.vmem [shape: f32[2,12], index: 2, kind: input, shape index: {}]   ;;  %s804_s3 = inlined_call_operand.vmem [shape: f32[2,14], index: 3, kind: input, shape index: {}]   ;;  %s805_s4 = inlined_call_operand.vmem [shape: f32[12,14], index: 4, kind: input, shape index: {}]   ;;  %s806_s5 = inlined_call_operand.hbm [shape: f32[8,14], index: 5, kind: output, shape index: {}]  }
   0x1   :  { %v23_v0 = vld [vmem:[%s802_s1] sm:$0xff]  ;;  %v24_v1 = vld [vmem:[%s802_s1 + $0x8] sm:$0xf]  ;;  %621 = vmatprep.subr.bf16.mxu0 %v678_v2  ;;  %vm725_vm2 = vmpackc.low %vm29_vm0, %vm679_vm1  ;;  %625 = vmatprep.subr.bf16.mxu1 %v678_v2  ;;  %v681_v6 = vmov 0.0  }
   0x2   :  { %v622_v3 = vpack.c.bf16 %v24_v1, %v23_v0  ;;  %v732_v5 = vld [vmem:[%s801_s0] sm:$0xff]  ;;  %601 = vmatprep.mubr.msk.f32.mxu0 %vm680_vm3, %v681_v6  ;;  %613 = vmatprep.mubr.msk.f32.mxu1 %vm680_vm3, %v681_v6 }
   0x3   :  { %v22_v7 = vmul.f32 %v732_v5, %v732_v5 }
   0x4   :  { %10 = vsyncpa [#allocation3], 0  ;;  %624 = vmatpush3.bf16.msk.msra.mxu0 %vm725_vm2, %v622_v3  ;;  %vm25_vm4 = vcmask 97280   ;;  %v320_v8 = vld [vmem:[%s803_s2] sm:$0x3]  ;;  %vm325_vm5 = vcmask 1041408  }
   0x5   :  { %604 = vmatprep.subr.mxu0 %v681_v6  ;;  %v401_v9 = vld [vmem:[%s805_s4] sm:$0xff]  ;;  %v402_v10 = vld [vmem:[%s805_s4 + $0x8] sm:$0xf]  ;;  %v682_v29 = vmov 683565275   ;;  %s688_s28 = smov [#allocation2]  }
   0x6   :  { %v626_v11 = vpack.c.bf16 %v402_v10, %v401_v9  ;;  %v683_v31 = vmov 2475754826   ;;  %v684_v34 = vmov 2131351028   ;;  %v685_v37 = vmov 2102212464  }
   0x7   :  { %602 = vmatmul.mubr.msk.f32.vlgmr.msra.gmra.mrb[0].mxu0 %vm25_vm4, %v22_v7  ;;  %v686_v40 = vmov 920167782   ;;  %v687_v43 = vmov 1326507024   ;;  %s563_s29 = sshll.u32 %s688_s28, 4  ;;  %s564_s29 = int_to_ptr.vmem [resolvable:$true] %s563_s29 }
   0x8   :  { %606 = vmatprep.mubr.msk.f32.mxu0 %vm680_vm3, %v681_v6  ;;  %605 = vmatpush3.msk.msra.mxu0 %vm325_vm5, %v320_v8  ;;  %s654_s30 = scalar_lea.vmem %s564_s29, 128  ;;  %p659_p1 = scmp.lt.s32.totalorder %s564_s29, %s564_s29 }
   0x9   :  { %628 = vmatpush3.bf16.msk.msra.mxu1 %vm725_vm2, %v626_v11  ;;  %p655_p0 = scmp.ne.s32.totalorder %s564_s29, %s654_s30  ;;  %p660_p2 = scmp.lt.s32.totalorder %s654_s30, %s654_s30 }
   0xa   :  { %616 = vmatprep.subr.mxu1 %v681_v6 }
   0xb   :  { %p661_p3 = por %p660_p2, %p659_p1 }
   0xd   :  { %p662_p4 = pnand %p661_p3, %p655_p0 }
  0xda   :  { %v99_v12 = vpop.f32.mrb[0].mxu0 }
  0xdb   :  { %646 = vrsqrt.f32 %v99_v12  ;;  %v603_v13 = vpop.f32.mrb[1].mxu0  ;;  %vm105_vm6 = vcmp.eq.f32.partialorder %v99_v12, inf  ;;  %v108_v16 = vand.u32 2147483648, %v99_v12  ;;  %vm107_vm7 = vcmp.eq.f32.partialorder %v99_v12, 0.0 }
  0xe5   :  { %v647_v14 = vpop.eup %646 }
  0xe6   :  { %v104_v15 = vmul.f32 %v647_v14, %v99_v12 }
  0xe8   :  { %v106_v17 = vsel %vm105_vm6, %v99_v12, %v104_v15 }
  0xe9   :  { %v759_v18 = vsel %vm107_vm7, %v108_v16, %v106_v17 }
  0xea   :  { %v113_v19 = vand.u32 2139095040, %v759_v18  ;;  %v110_v23 = vand.u32 2147483647, %v759_v18  ;;  %vm112_vm15 = vcmp.lt.s32.totalorder %v759_v18, 0 }
  0xec   :  { %v114_v20 = vshrl.u32 %v113_v19, 23  ;;  %v117_v26 = vand.u32 8388607, %v110_v23  ;;  %vm111_vm0 = vcmp.le.f32.partialorder %v110_v23, 0.7853982 }
  0xee   :  { %v573_v21 = vadd.s32 4294967169, %v114_v20  ;;  %v118_v45 = vor.u32 8388608, %v117_v26 }
  0xf0   :  { %v120_v22 = vadd.s32 1, %v573_v21  ;;  %v158_v59 = vshll.u32 %v118_v45, 8 }
  0xf2   :  { %vm121_vm8 = vcmp.gt.s32.totalorder %v120_v22, 0 }
  0xf3   :  { %v122_v24 = vsel %vm121_vm8, %v120_v22, 0 }
  0xf4   :  { %v124_v25 = vand.u32 31, %v122_v24  ;;  %v123_v28 = vshrl.u32 %v122_v24, 5 }
  0xf6   :  { %v125_v27 = vsub.s32 32, %v124_v25  ;;  %v127_v30 = vshll.u32 %v682_v29, %v124_v25  ;;  %v130_v32 = vshll.u32 %v683_v31, %v124_v25  ;;  %v133_v36 = vshll.u32 %v684_v34, %v124_v25 }
  0xf7   :  { %v136_v39 = vshll.u32 %v685_v37, %v124_v25  ;;  %v139_v42 = vshll.u32 %v686_v40, %v124_v25  ;;  %vm142_vm9 = vcmp.lt.s32.totalorder %v123_v28, 1  ;;  %vm145_vm10 = vcmp.lt.s32.totalorder %v123_v28, 4 }
  0xf8   :  { %v128_v33 = vshrl.u32 %v683_v31, %v125_v27  ;;  %v131_v35 = vshrl.u32 %v684_v34, %v125_v27  ;;  %v134_v38 = vshrl.u32 %v685_v37, %v125_v27  ;;  %v137_v41 = vshrl.u32 %v686_v40, %v125_v27 }
  0xf9   :  { %v140_v44 = vshrl.u32 %v687_v43, %v125_v27  ;;  %v126_v54 = vshrl.u32 %v682_v29, %v125_v27  ;;  %vm144_vm11 = vcmp.lt.s32.totalorder %v123_v28, 3  ;;  %vm143_vm12 = vcmp.lt.s32.totalorder %v123_v28, 2 }
  0xfa   :  { %v129_v46 = vor.u32 %v128_v33, %v127_v30  ;;  %v132_v47 = vor.u32 %v131_v35, %v130_v32  ;;  %v135_v48 = vor.u32 %v134_v38, %v133_v36  ;;  %v138_v49 = vor.u32 %v137_v41, %v136_v39 }
  0xfb   :  { %v141_v50 = vor.u32 %v140_v44, %v139_v42  ;;  %v213_v40 = vadd.f32 1e-06, %v759_v18 }
  0xfc   :  { %v147_v51 = vsel %vm145_vm10, %v135_v48, 2102212464  ;;  %v150_v52 = vsel %vm142_vm9, %v129_v46, %v132_v47  ;;  %v154_v53 = vsel %vm142_vm9, %v132_v47, %v135_v48  ;;  %v151_v55 = vsel %vm145_vm10, %v138_v49, 920167782 }
  0xfd   :  { %v155_v56 = vsel %vm145_vm10, %v141_v50, 1326507024  ;;  %v152_v57 = vsel %vm144_vm11, %v135_v48, %v151_v55  ;;  %v146_v60 = vsel %vm142_vm9, %v126_v54, %v129_v46  ;;  %v148_v61 = vsel %vm144_vm11, %v132_v47, %v147_v51 }
  0xfe   :  { %v156_v58 = vsel %vm144_vm11, %v138_v49, %v155_v56  ;;  %v153_v62 = vsel %vm143_vm12, %v150_v52, %v152_v57  ;;  %v149_v4 = vsel %vm143_vm12, %v146_v60, %v148_v61  ;;  %vm202_vm10 = vweird.f32 %v759_v18  ;;  %v400_v60 = vld [vmem:[%s804_s3] sm:$0x3] }
  0xff   :  { %v157_v63 = vsel %vm143_vm12, %v154_v53, %v156_v58  ;;  %v768_v2 = vmul.u32.u64.low %v158_v59, %v153_v62  ;;  %v769_v3 = vmul.u32.u64.high %v158_v59, %v153_v62, %v768_v2  ;;  %v165_v8 = vmul.u32 %v158_v59, %v149_v4 }
 0x100   :  { %v765_v0 = vmul.u32.u64.low %v158_v59, %v157_v63  ;;  %v766_v1 = vmul.u32.u64.high %v158_v59, %v157_v63, %v765_v0  ;;  %vm321_vm11 = vcmask 15360   ;;  %vm555_vm12 = vcmask 113664  }
 0x101   :  { %v168_v7 = vadd.s32 1, %v769_v3 }
 0x102   :  { %vm167_vm13 = vc.u32 %v766_v1, %v768_v2  ;;  %v166_v21 = vadd.s32 %v768_v2, %v766_v1 }
 0x103   :  { %v169_v9 = vsel %vm167_vm13, %v168_v7, %v769_v3 }
 0x104   :  { %v170_v10 = vadd.s32 %v169_v9, %v165_v8 }
 0x106   :  { %v171_v11 = vadd.s32 536870912, %v170_v10 }
 0x108   :  { %v172_v12 = vshrl.u32 %v171_v11, 30 }
 0x10a   :  { %v173_v13 = vshll.u32 %v172_v12, 30  ;;  %v196_v34 = vsub.s32 4, %v172_v12 }
 0x10c   :  { %v174_v14 = vsub.s32 %v170_v10, %v173_v13  ;;  %v197_v37 = vsel %vm112_vm15, %v196_v34, %v172_v12 }
 0x10d   :  { %v199_v39 = vsel %vm111_vm0, 0, %v197_v37 }
 0x10e   :  { %v176_v15 = vsub.s32 0, %v174_v14  ;;  %v308_v41 = vadd.s32 3, %v199_v39  ;;  %v203_v43 = vand.u32 3, %v199_v39 }
 0x110   :  { %v574_v16 = vmin.u32 %v176_v15, %v174_v14  ;;  %v309_v42 = vand.u32 3, %v308_v41  ;;  %vm208_vm2 = vcmp.eq.s32.totalorder %v203_v43, 2  ;;  %vm205_vm7 = vcmp.eq.s32.totalorder %v203_v43, 0 }
 0x111   :  { %vm204_vm9 = vcmp.lt.s32.totalorder %v203_v43, 2 }
 0x112   :  { %v178_v17 = vclz %v574_v16  ;;  %vm314_vm1 = vcmp.eq.s32.totalorder %v309_v42, 2  ;;  %vm311_vm6 = vcmp.eq.s32.totalorder %v309_v42, 0  ;;  %vm310_vm8 = vcmp.lt.s32.totalorder %v309_v42, 2 }
 0x114   :  { %v575_v19 = vadd.s32 4294967294, %v178_v17 }
 0x116   :  { %vm576_vm14 = vcmp.lt.s32.totalorder %v575_v19, 0 }
 0x117   :  { %v181_v20 = vsel %vm576_vm14, 0, %v575_v19 }
 0x118   :  { %v182_v22 = vsub.s32 32, %v181_v20  ;;  %v186_v24 = vsub.s32 4294967266, %v181_v20  ;;  %v183_v25 = vshll.u32 %v174_v14, %v181_v20 }
 0x11a   :  { %v184_v26 = vshrl.u32 %v166_v21, %v182_v22  ;;  %v187_v27 = vadd.s32 127, %v186_v24 }
 0x11c   :  { %v185_v28 = vor.u32 %v184_v26, %v183_v25  ;;  %v188_v29 = vshll.u32 %v187_v27, 23 }
 0x11e   :  { %v189_v30 = vor.u32 4788187, %v188_v29  ;;  %v192_v32 = vcvt.s32.f32 %v185_v28 }
 0x120   :  { %v190_v31 = vand.u32 2147483647, %v189_v30 }
 0x122   :  { %v193_v33 = vmul.f32 %v192_v32, %v190_v31 }
 0x124   :  { %v194_v35 = vxor.u32 2147483648, %v193_v33 }
 0x126   :  { %v195_v36 = vsel %vm112_vm15, %v194_v35, %v193_v33 }
 0x127   :  { %v198_v38 = vsel %vm111_vm0, %v759_v18, %v195_v36 }
 0x128   :  { %648 = vcosq.f32 %v198_v38 }
 0x129   :  { %650 = vsinq.f32 %v198_v38 }
 0x12a   :  { %652 = vrcp.f32 %v213_v40 }
 0x132   :  { %v649_v44 = vpop.eup %648 }
 0x133   :  { %v651_v45 = vpop.eup %650  ;;  %v209_v46 = vxor.u32 2147483648, %v649_v44 }
 0x134   :  { %v206_v47 = vxor.u32 2147483648, %v651_v45  ;;  %v653_v53 = vpop.eup %652 }
 0x135   :  { %v316_v23 = vsel %vm314_vm1, %v209_v46, %v651_v45  ;;  %v210_v48 = vsel %vm208_vm2, %v209_v46, %v651_v45 }
 0x136   :  { %v313_v49 = vsel %vm311_vm6, %v649_v44, %v206_v47  ;;  %v207_v50 = vsel %vm205_vm7, %v649_v44, %v206_v47 }
 0x137   :  { %v317_v51 = vsel %vm310_vm8, %v313_v49, %v316_v23  ;;  %v211_v52 = vsel %vm204_vm9, %v207_v50, %v210_v48 }
 0x138   :  { %v318_v54 = vsel %vm202_vm10, nan, %v317_v51  ;;  %v212_v55 = vsel %vm202_vm10, nan, %v211_v52 }
 0x139   :  { %v319_v56 = vmul.f32 %v653_v53, %v318_v54 }
 0x13b   :  { %607 = vmatmul.mubr.msk.f32.vlgmr.msra.gmra.mrb[2].mxu0 %vm321_vm11, %v319_v56 }
 0x20e   :  { %v395_v57 = vpop.f32.mrb[2].mxu0 }
 0x20f   :  { %v399_v58 = vmul.f32 %v395_v57, %v732_v5  ;;  %v608_v59 = vpop.f32.mrb[3].mxu0 }
 0x211   :  { %614 = vmatmul.mubr.msk.f32.vlgmr.msra.gmra.mrb[0].mxu1 %vm25_vm4, %v399_v58 }
 0x212   :  { %617 = vmatpush3.msk.msra.mxu1 %vm325_vm5, %v400_v60  ;;  %618 = vmatprep.mubr.msk.f32.mxu1 %vm680_vm3, %v681_v6 }
 0x219   :  { %619 = vmatmul.mubr.msk.f32.vlgmr.msra.gmra.mrb[0].mxu1 %vm321_vm11, %v212_v55 }
 0x2ec   :  { %v551_v18 = vpop.f32.mrb[0].mxu1 }
 0x2ed   :  { %556 = vst.msk [vmem:[#allocation2] sm:$0xff] %vm555_vm12, %v551_v18  ;;  %v620_v5 = vpop.f32.mrb[1].mxu1 }
 0x2ee   :  { %665 = shalt.err (!%p662_p4)
}
 0x2ef   :  { %s666_s7 = scalar_lea.hbm %s806_s5, 128 }
 0x2f0   :  { %p667_p5 = scmp.ne.s32.totalorder %s806_s5, %s666_s7  ;;  %p670_p6 = scmp.lt.u32.totalorder %s666_s7, %s806_s5 }
 0x2f2   :  { %p672_p7 = pnand %p670_p6, %p667_p5 }
 0x2f4   :  { %675 = shalt.err (!%p672_p7)
}
 0x2f5   :  { %566 = dma.vmem_to_hbm [thread:$0]  %s564_s29, 128, %s806_s5, [#allocation3]  }
 0x2f6   :  { %676 = dma.done.wait [#allocation3], 128  }
 0x2f7   :  { %677 = vsyncadd [#allocation3], 4294967168 }
 0x2f8   :  { %570 = vsyncpa [#allocation3], 1 }

</bundles_post_ra>
